<compile_context>
chip_gen: v7x
topology: tpu7x:2x2x1
jax: 0.10.0
libtpu: 0.0.40
codegen_flags: <defaults>
</compile_context>

<pallas_src>
import functools

import jax
import jax.numpy as jnp
from jax.experimental import pallas as pl
from jax.experimental.pallas import tpu as pltpu


def _round_up(x, m):
    return ((x + m - 1) // m) * m


def _mlp_kernel(x_ref, w1_ref, b1_ref, w2_ref, b2_ref, o_ref):
    # First linear (MXU, f32 accumulation) + bias + ReLU (VPU, f32).
    h = jnp.dot(x_ref[...], w1_ref[...], preferred_element_type=jnp.float32)
    h = jnp.maximum(h + b1_ref[...], 0.0)        # b1 is (1, H), broadcasts
    # Second linear: cast activations back to the (possibly bf16) matmul
    # dtype, accumulate in f32, add bias in f32.
    y = jnp.dot(h.astype(w2_ref.dtype), w2_ref[...],
                preferred_element_type=jnp.float32)
    o_ref[...] = (y + b2_ref[...]).astype(o_ref.dtype)


@functools.partial(jax.jit, static_argnames=("batch_tile", "use_bf16"))
def mnist_forward(x_nchw, w1, b1, w2, b2, *, batch_tile=256, use_bf16=True):
    """x_nchw: (N, 1, 28, 28) float32. Returns (N, output_dimension) float32."""
    in_dim = 28 * 28
    hid = w1.shape[1]
    out = w2.shape[1]

    # Glue: the x.view(-1, 784) step.
    x2d = x_nchw.reshape(-1, in_dim)
    n_rows = x2d.shape[0]

    # Padded (lane/sublane friendly) dimensions.
    k_pad = _round_up(in_dim, 128)        # 784 -> 896
    hid_pad = _round_up(hid, 128)
    out_pad = _round_up(out, 128)         # lane-dense output store

    # Batch tile: big enough to fill the MXU M dimension and amortize the
    # per-grid-step overhead, but clamped for tiny batches. Always a
    # multiple of 8 (sublane constraint).
    bt = min(batch_tile, _round_up(n_rows, 8))
    n_pad = _round_up(n_rows, bt)

    # Zero-pad. Extra rows / K columns / hidden units / output lanes all
    # contribute exactly zero (relu(0 + 0) = 0, zero weight rows/cols),
    # so the valid region is bit-identical to the unpadded computation.
    x_p = jnp.pad(x2d, ((0, n_pad - n_rows), (0, k_pad - in_dim)))
    w1_p = jnp.pad(w1, ((0, k_pad - in_dim), (0, hid_pad - hid)))
    b1_p = jnp.pad(b1, (0, hid_pad - hid)).reshape(1, hid_pad)
    w2_p = jnp.pad(w2, ((0, hid_pad - hid), (0, out_pad - out)))
    b2_p = jnp.pad(b2, (0, out_pad - out)).reshape(1, out_pad)

    # bf16 matmul operands (f32 accumulation in-kernel); biases stay f32.
    mm_dtype = jnp.bfloat16 if use_bf16 else x_p.dtype
    x_p = x_p.astype(mm_dtype)
    w1_p = w1_p.astype(mm_dtype)
    w2_p = w2_p.astype(mm_dtype)
    b1_p = b1_p.astype(jnp.float32)
    b2_p = b2_p.astype(jnp.float32)

    grid = (n_pad // bt,)

    y_pad = pl.pallas_call(
        _mlp_kernel,
        out_shape=jax.ShapeDtypeStruct((n_pad, out_pad), jnp.float32),
        grid_spec=pltpu.PrefetchScalarGridSpec(
            num_scalar_prefetch=0,
            grid=grid,
            in_specs=[
                # Activations: tile over batch only; padded K axis resident.
                pl.BlockSpec((bt, k_pad), lambda i: (i, 0)),
                # Parameters: full arrays, same block for every grid step
                # (constant index_map -> stay resident in VMEM).
                pl.BlockSpec((k_pad, hid_pad), lambda i: (0, 0)),
                pl.BlockSpec((1, hid_pad), lambda i: (0, 0)),
                pl.BlockSpec((hid_pad, out_pad), lambda i: (0, 0)),
                pl.BlockSpec((1, out_pad), lambda i: (0, 0)),
            ],
            out_specs=pl.BlockSpec((bt, out_pad), lambda i: (i, 0)),
        ),
        compiler_params=pltpu.CompilerParams(
            dimension_semantics=("parallel",),
        ),
    )(x_p, w1_p, b1_p, w2_p, b2_p)

    # Strip batch + output-lane padding.
    return y_pad[:n_rows, :out]


def _reference(x_nchw, w1, b1, w2, b2):
    x = x_nchw.reshape(-1, 28 * 28)
    h = jnp.maximum(x @ w1 + b1, 0.0)
    return h @ w2 + b2


if __name__ == "__main__":
    # Shapes implied by the module: input_dimension = 28*28 (fixed by the
    # view), small hidden and MNIST-style 10-class output.
    batch = 8
    input_dimension = 28 * 28
    hidden_dimension = 128
    output_dimension = 10

    key = jax.random.PRNGKey(0)
    kx, k1, kb1, k2, kb2 = jax.random.split(key, 5)

    x = jax.random.normal(kx, (batch, 1, 28, 28), dtype=jnp.float32)

    # PyTorch Linear stores (out, in); we keep the transposed (in, out)
    # layout the kernel consumes.
    w1 = jax.random.normal(k1, (input_dimension, hidden_dimension),
                           dtype=jnp.float32) * 0.02
    b1 = jax.random.normal(kb1, (hidden_dimension,), dtype=jnp.float32) * 0.01
    w2 = jax.random.normal(k2, (hidden_dimension, output_dimension),
                           dtype=jnp.float32) * 0.02
    b2 = jax.random.normal(kb2, (output_dimension,), dtype=jnp.float32) * 0.01

    ref = _reference(x, w1, b1, w2, b2)

    # f32 path: tight check against the reference.
    out_f32 = mnist_forward(x, w1, b1, w2, b2, use_bf16=False)
    jax.block_until_ready(out_f32)
    assert out_f32.shape == (batch, output_dimension)
    assert jnp.allclose(out_f32, ref, atol=1e-4, rtol=1e-4)

    # bf16-operand path (default): f32 accumulation, looser tolerance.
    out_bf16 = mnist_forward(x, w1, b1, w2, b2)
    jax.block_until_ready(out_bf16)
    assert out_bf16.shape == (batch, output_dimension)
    assert jnp.allclose(out_bf16, ref, atol=5e-2, rtol=5e-2)

    print("KERNEL_OK")
</pallas_src>

<mosaic_0001>
module attributes {stable_mosaic.version = 11 : i64} {
  func.func @_mlp_kernel(%arg0: i32, %arg1: memref<8x896xf32, #tpu.memory_space<vmem>>, %arg2: memref<896x128xf32, #tpu.memory_space<vmem>>, %arg3: memref<1x128xf32, #tpu.memory_space<vmem>>, %arg4: memref<128x128xf32, #tpu.memory_space<vmem>>, %arg5: memref<1x128xf32, #tpu.memory_space<vmem>>, %arg6: memref<8x128xf32, #tpu.memory_space<vmem>>) attributes {dimension_semantics = [#tpu.dimension_semantics<parallel>], iteration_bounds = array<i64: 1>, scalar_prefetch = 0 : i64, scratch_operands = 0 : i64, tpu.core_type = #tpu.core_type<tc>, window_params = [{transform_indices = @transform_0, window_bounds = array<i64: 8, 896>}, {pipeline_mode = #tpu.pipeline_mode<synchronous>, transform_indices = @transform_1, window_bounds = array<i64: 896, 128>}, {pipeline_mode = #tpu.pipeline_mode<synchronous>, transform_indices = @transform_2, window_bounds = array<i64: 1, 128>}, {pipeline_mode = #tpu.pipeline_mode<synchronous>, transform_indices = @transform_3, window_bounds = array<i64: 128, 128>}, {pipeline_mode = #tpu.pipeline_mode<synchronous>, transform_indices = @transform_4, window_bounds = array<i64: 1, 128>}, {transform_indices = @transform_5, window_bounds = array<i64: 8, 128>}]} {
    %c0 = arith.constant 0 : index
    %c0_0 = arith.constant 0 : index
    %0 = vector.load %arg1[%c0, %c0_0] : memref<8x896xf32, #tpu.memory_space<vmem>>, vector<8x896xf32>
    %c0_1 = arith.constant 0 : index
    %c0_2 = arith.constant 0 : index
    %1 = vector.load %arg2[%c0_1, %c0_2] : memref<896x128xf32, #tpu.memory_space<vmem>>, vector<896x128xf32>
    %cst = arith.constant dense<0.000000e+00> : vector<8x128xf32>
    %2 = tpu.matmul %0, %1, %cst {dimension_numbers = #tpu.dot_dimension_numbers<[1], [0], [0], [1], [0, 0, 1, 1], [], []>} : vector<8x896xf32>, vector<896x128xf32>, vector<8x128xf32> -> vector<8x128xf32>
    %c0_3 = arith.constant 0 : index
    %c0_4 = arith.constant 0 : index
    %3 = vector.load %arg3[%c0_3, %c0_4] : memref<1x128xf32, #tpu.memory_space<vmem>>, vector<1x128xf32>
    %4 = vector.broadcast %3 : vector<1x128xf32> to vector<8x128xf32>
    %5 = arith.addf %2, %4 : vector<8x128xf32>
    %cst_5 = arith.constant 0.000000e+00 : f32
    %6 = vector.broadcast %cst_5 : f32 to vector<8x128xf32>
    %7 = arith.maximumf %5, %6 : vector<8x128xf32>
    %c0_6 = arith.constant 0 : index
    %c0_7 = arith.constant 0 : index
    %8 = vector.load %arg4[%c0_6, %c0_7] : memref<128x128xf32, #tpu.memory_space<vmem>>, vector<128x128xf32>
    %cst_8 = arith.constant dense<0.000000e+00> : vector<8x128xf32>
    %9 = tpu.matmul %7, %8, %cst_8 {dimension_numbers = #tpu.dot_dimension_numbers<[1], [0], [0], [1], [0, 0, 1, 1], [], []>} : vector<8x128xf32>, vector<128x128xf32>, vector<8x128xf32> -> vector<8x128xf32>
    %c0_9 = arith.constant 0 : index
    %c0_10 = arith.constant 0 : index
    %10 = vector.load %arg5[%c0_9, %c0_10] : memref<1x128xf32, #tpu.memory_space<vmem>>, vector<1x128xf32>
    %11 = vector.broadcast %10 : vector<1x128xf32> to vector<8x128xf32>
    %12 = arith.addf %9, %11 : vector<8x128xf32>
    %c0_11 = arith.constant 0 : index
    %c0_12 = arith.constant 0 : index
    %13 = vector.load %arg6[%c0_11, %c0_12] : memref<8x128xf32, #tpu.memory_space<vmem>>, vector<8x128xf32>
    tpu.vector_store %arg6[%c0_11, %c0_12], %12 {strides = array<i32>} : memref<8x128xf32, #tpu.memory_space<vmem>>, vector<8x128xf32>,
    return
  }
  func.func @transform_0(%arg0: i32) -> (i32, i32) {
    %c0_i32 = arith.constant 0 : i32
    %c0_i32_0 = arith.constant 0 : i32
    return %arg0, %c0_i32 : i32, i32
  }
  func.func @transform_1(%arg0: i32) -> (i32, i32) {
    %c0_i32 = arith.constant 0 : i32
    %c0_i32_0 = arith.constant 0 : i32
    %c0_i32_1 = arith.constant 0 : i32
    return %c0_i32, %c0_i32_0 : i32, i32
  }
  func.func @transform_2(%arg0: i32) -> (i32, i32) {
    %c0_i32 = arith.constant 0 : i32
    %c0_i32_0 = arith.constant 0 : i32
    %c0_i32_1 = arith.constant 0 : i32
    return %c0_i32, %c0_i32_0 : i32, i32
  }
  func.func @transform_3(%arg0: i32) -> (i32, i32) {
    %c0_i32 = arith.constant 0 : i32
    %c0_i32_0 = arith.constant 0 : i32
    %c0_i32_1 = arith.constant 0 : i32
    return %c0_i32, %c0_i32_0 : i32, i32
  }
  func.func @transform_4(%arg0: i32) -> (i32, i32) {
    %c0_i32 = arith.constant 0 : i32
    %c0_i32_0 = arith.constant 0 : i32
    %c0_i32_1 = arith.constant 0 : i32
    return %c0_i32, %c0_i32_0 : i32, i32
  }
  func.func @transform_5(%arg0: i32) -> (i32, i32) {
    %c0_i32 = arith.constant 0 : i32
    %c0_i32_0 = arith.constant 0 : i32
    return %arg0, %c0_i32 : i32, i32
  }
}

</mosaic_0001>

<bundles_post_ra>
// kernel: mnist_forward.1
= control target key start
LH: loop header
LB: loop body
LE: loop exit
PB: predicated region body
PF: predicated region fallthrough
CT: control target
= control target key end

     0   :  { %vm920_vm0 = vmmov 0   ;;  %s1396_s0 = inlined_call_operand.vmem [shape: f32[8,896], index: 0, kind: input, shape index: {}]   ;;  %s1397_s1 = inlined_call_operand.vmem [shape: f32[896,128], index: 1, kind: input, shape index: {}]   ;;  %s1398_s2 = inlined_call_operand.vmem [shape: f32[1,128], index: 2, kind: input, shape index: {}]   ;;  %s1399_s3 = inlined_call_operand.vmem [shape: f32[128,128], index: 3, kind: input, shape index: {}]   ;;  %s1400_s4 = inlined_call_operand.vmem [shape: f32[1,128], index: 4, kind: input, shape index: {}]   ;;  %s1401_s5 = inlined_call_operand.hbm [shape: f32[8,128], index: 5, kind: output, shape index: {}]  }
   0x1   :  { %v44_v0 = vld [vmem:[%s1397_s1 + $0x80] sm:$0xff]  ;;  %v45_v1 = vld [vmem:[%s1397_s1 + $0x88] sm:$0xff]  ;;  %v46_v11 = vld [vmem:[%s1397_s1 + $0x90] sm:$0xff] }
   0x2   :  { %v28_v2 = vld [vmem:[%s1397_s1] sm:$0xff]  ;;  %v747_v3 = vpack.c.bf16 %v45_v1, %v44_v0  ;;  %v29_v4 = vld [vmem:[%s1397_s1 + $0x8] sm:$0xff]  ;;  %v47_v13 = vld [vmem:[%s1397_s1 + $0x98] sm:$0xff] }
   0x3   :  { %v76_v5 = vld [vmem:[%s1397_s1 + $0x180] sm:$0xff]  ;;  %v77_v6 = vld [vmem:[%s1397_s1 + $0x188] sm:$0xff]  ;;  %v749_v7 = vpack.c.bf16 %v29_v4, %v28_v2  ;;  %v30_v14 = vld [vmem:[%s1397_s1 + $0x10] sm:$0xff]  ;;  %v751_v16 = vpack.c.bf16 %v47_v13, %v46_v11 }
   0x4   :  { %v779_v8 = vpack.c.bf16 %v77_v6, %v76_v5  ;;  %v60_v9 = vld [vmem:[%s1397_s1 + $0x100] sm:$0xff]  ;;  %v61_v10 = vld [vmem:[%s1397_s1 + $0x108] sm:$0xff]  ;;  %748 = vmatprep.subr.bf16.mxu0 %v747_v3  ;;  %v31_v15 = vld [vmem:[%s1397_s1 + $0x18] sm:$0xff] }
   0x5   :  { %v781_v12 = vpack.c.bf16 %v61_v10, %v60_v9  ;;  %750 = vmatpush3.bf16.msra.mxu0 %v749_v7  ;;  %v753_v17 = vpack.c.bf16 %v31_v15, %v30_v14  ;;  %v78_v18 = vld [vmem:[%s1397_s1 + $0x190] sm:$0xff]  ;;  %v79_v19 = vld [vmem:[%s1397_s1 + $0x198] sm:$0xff]  ;;  %v48_v23 = vld [vmem:[%s1397_s1 + $0xa0] sm:$0xff] }
   0x6   :  { %780 = vmatprep.subr.bf16.mxu1 %v779_v8  ;;  %v62_v20 = vld [vmem:[%s1397_s1 + $0x110] sm:$0xff]  ;;  %v783_v21 = vpack.c.bf16 %v79_v19, %v78_v18  ;;  %v63_v22 = vld [vmem:[%s1397_s1 + $0x118] sm:$0xff]  ;;  %v49_v24 = vld [vmem:[%s1397_s1 + $0xa8] sm:$0xff]  ;;  %752 = vmatprep.subr.bf16.mxu0 %v751_v16 }
   0x7   :  { %782 = vmatpush3.bf16.msra.mxu1 %v781_v12  ;;  %v785_v25 = vpack.c.bf16 %v63_v22, %v62_v20  ;;  %v755_v26 = vpack.c.bf16 %v49_v24, %v48_v23  ;;  %v32_v27 = vld [vmem:[%s1397_s1 + $0x20] sm:$0xff]  ;;  %v33_v28 = vld [vmem:[%s1397_s1 + $0x28] sm:$0xff]  ;;  %v50_v35 = vld [vmem:[%s1397_s1 + $0xb0] sm:$0xff] }
   0x8   :  { %v80_v29 = vld [vmem:[%s1397_s1 + $0x1a0] sm:$0xff]  ;;  %784 = vmatprep.subr.bf16.mxu1 %v783_v21  ;;  %v81_v30 = vld [vmem:[%s1397_s1 + $0x1a8] sm:$0xff]  ;;  %v757_v33 = vpack.c.bf16 %v33_v28, %v32_v27  ;;  %v51_v36 = vld [vmem:[%s1397_s1 + $0xb8] sm:$0xff] }
   0x9   :  { %v64_v31 = vld [vmem:[%s1397_s1 + $0x120] sm:$0xff]  ;;  %v65_v32 = vld [vmem:[%s1397_s1 + $0x128] sm:$0xff]  ;;  %754 = vmatpush3.bf16.msra.mxu0 %v753_v17  ;;  %v787_v34 = vpack.c.bf16 %v81_v30, %v80_v29  ;;  %v34_v37 = vld [vmem:[%s1397_s1 + $0x30] sm:$0xff]  ;;  %v759_v39 = vpack.c.bf16 %v51_v36, %v50_v35 }
   0xa   :  { %756 = vmatprep.subr.bf16.mxu0 %v755_v26  ;;  %v789_v38 = vpack.c.bf16 %v65_v32, %v64_v31  ;;  %v35_v40 = vld [vmem:[%s1397_s1 + $0x38] sm:$0xff]  ;;  %v82_v41 = vld [vmem:[%s1397_s1 + $0x1b0] sm:$0xff]  ;;  %v52_v46 = vld [vmem:[%s1397_s1 + $0xc0] sm:$0xff] }
   0xb   :  { %786 = vmatpush3.bf16.msra.mxu1 %v785_v25  ;;  %v83_v42 = vld [vmem:[%s1397_s1 + $0x1b8] sm:$0xff]  ;;  %v66_v44 = vld [vmem:[%s1397_s1 + $0x130] sm:$0xff]  ;;  %v53_v47 = vld [vmem:[%s1397_s1 + $0xc8] sm:$0xff]  ;;  %v761_v48 = vpack.c.bf16 %v35_v40, %v34_v37 }
   0xc   :  { %788 = vmatprep.subr.bf16.mxu1 %v787_v34  ;;  %v791_v43 = vpack.c.bf16 %v83_v42, %v82_v41  ;;  %v67_v45 = vld [vmem:[%s1397_s1 + $0x138] sm:$0xff]  ;;  %v84_v49 = vld [vmem:[%s1397_s1 + $0x1c0] sm:$0xff]  ;;  %v85_v50 = vld [vmem:[%s1397_s1 + $0x1c8] sm:$0xff]  ;;  %v763_v52 = vpack.c.bf16 %v53_v47, %v52_v46 }
   0xd   :  { %758 = vmatpush3.bf16.msra.mxu0 %v757_v33  ;;  %v793_v51 = vpack.c.bf16 %v67_v45, %v66_v44  ;;  %v36_v53 = vld [vmem:[%s1397_s1 + $0x40] sm:$0xff]  ;;  %v37_v54 = vld [vmem:[%s1397_s1 + $0x48] sm:$0xff]  ;;  %v795_v56 = vpack.c.bf16 %v85_v50, %v84_v49  ;;  %v54_v58 = vld [vmem:[%s1397_s1 + $0xd0] sm:$0xff] }
   0xe   :  { %760 = vmatprep.subr.bf16.mxu0 %v759_v39  ;;  %v68_v55 = vld [vmem:[%s1397_s1 + $0x140] sm:$0xff]  ;;  %v69_v57 = vld [vmem:[%s1397_s1 + $0x148] sm:$0xff]  ;;  %v55_v59 = vld [vmem:[%s1397_s1 + $0xd8] sm:$0xff]  ;;  %v765_v62 = vpack.c.bf16 %v37_v54, %v36_v53 }
   0xf   :  { %790 = vmatpush3.bf16.msra.mxu1 %v789_v38  ;;  %v86_v60 = vld [vmem:[%s1397_s1 + $0x1d0] sm:$0xff]  ;;  %v87_v61 = vld [vmem:[%s1397_s1 + $0x1d8] sm:$0xff]  ;;  %v797_v63 = vpack.c.bf16 %v69_v57, %v68_v55  ;;  %v767_v0 = vpack.c.bf16 %v55_v59, %v54_v58  ;;  %v56_v6 = vld [vmem:[%s1397_s1 + $0xe0] sm:$0xff] }
  0x10   :  { %792 = vmatprep.subr.bf16.mxu1 %v791_v43  ;;  %v38_v1 = vld [vmem:[%s1397_s1 + $0x50] sm:$0xff]  ;;  %v39_v2 = vld [vmem:[%s1397_s1 + $0x58] sm:$0xff]  ;;  %v799_v4 = vpack.c.bf16 %v87_v61, %v86_v60  ;;  %v57_v7 = vld [vmem:[%s1397_s1 + $0xe8] sm:$0xff] }
  0x11   :  { %762 = vmatpush3.bf16.msra.mxu0 %v761_v48  ;;  %v70_v3 = vld [vmem:[%s1397_s1 + $0x150] sm:$0xff]  ;;  %v71_v5 = vld [vmem:[%s1397_s1 + $0x158] sm:$0xff]  ;;  %v88_v8 = vld [vmem:[%s1397_s1 + $0x1e0] sm:$0xff]  ;;  %v769_v10 = vpack.c.bf16 %v39_v2, %v38_v1  ;;  %v771_v14 = vpack.c.bf16 %v57_v7, %v56_v6  ;;  %v921_v1 = vmov 0.0  }
  0x12   :  { %764 = vmatprep.subr.bf16.mxu0 %v763_v52  ;;  %v89_v9 = vld [vmem:[%s1397_s1 + $0x1e8] sm:$0xff]  ;;  %v40_v11 = vld [vmem:[%s1397_s1 + $0x60] sm:$0xff]  ;;  %v801_v13 = vpack.c.bf16 %v71_v5, %v70_v3  ;;  %v58_v19 = vld [vmem:[%s1397_s1 + $0xf0] sm:$0xff] }
  0x13   :  { %794 = vmatpush3.bf16.msra.mxu1 %v793_v51  ;;  %v22_v12 = vld [vmem:[%s1396_s0 + $0x8] sm:$0xff]  ;;  %v72_v16 = vld [vmem:[%s1397_s1 + $0x160] sm:$0xff]  ;;  %v803_v18 = vpack.c.bf16 %v89_v9, %v88_v8  ;;  %v59_v20 = vld [vmem:[%s1397_s1 + $0xf8] sm:$0xff]  ;;  %v919_v51 = vmov 0.0|0.0  }
  0x14   :  { %796 = vmatprep.subr.bf16.mxu1 %v795_v56  ;;  %v41_v15 = vld [vmem:[%s1397_s1 + $0x68] sm:$0xff]  ;;  %211 = vmatprep.mubr.f32.mxu0 %v22_v12  ;;  %v24_v21 = vld [vmem:[%s1396_s0 + $0x18] sm:$0xff]  ;;  %v90_v22 = vld [vmem:[%s1397_s1 + $0x1f0] sm:$0xff]  ;;  %v775_v26 = vpack.c.bf16 %v59_v20, %v58_v19 }
  0x15   :  { %766 = vmatpush3.bf16.msra.mxu0 %v765_v62  ;;  %v73_v17 = vld [vmem:[%s1397_s1 + $0x168] sm:$0xff]  ;;  %v91_v23 = vld [vmem:[%s1397_s1 + $0x1f8] sm:$0xff]  ;;  %281 = vmatprep.mubr.f32.mxu1 %v24_v21  ;;  %v773_v24 = vpack.c.bf16 %v41_v15, %v40_v11  ;;  %v42_v27 = vld [vmem:[%s1397_s1 + $0x70] sm:$0xff] }
  0x16   :  { %768 = vmatprep.subr.bf16.mxu0 %v767_v0  ;;  %v805_v25 = vpack.c.bf16 %v73_v17, %v72_v16  ;;  %v43_v28 = vld [vmem:[%s1397_s1 + $0x78] sm:$0xff]  ;;  %v74_v29 = vld [vmem:[%s1397_s1 + $0x170] sm:$0xff]  ;;  %v807_v30 = vpack.c.bf16 %v91_v23, %v90_v22  ;;  %v108_v32 = vld [vmem:[%s1397_s1 + $0x280] sm:$0xff] }
  0x17   :  { %798 = vmatpush3.bf16.msra.mxu1 %v797_v63  ;;  %v75_v31 = vld [vmem:[%s1397_s1 + $0x178] sm:$0xff]  ;;  %v109_v33 = vld [vmem:[%s1397_s1 + $0x288] sm:$0xff]  ;;  %v777_v34 = vpack.c.bf16 %v43_v28, %v42_v27  ;;  %v92_v37 = vld [vmem:[%s1397_s1 + $0x200] sm:$0xff] }
  0x18   :  { %800 = vmatprep.subr.bf16.mxu1 %v799_v4  ;;  %v809_v35 = vpack.c.bf16 %v75_v31, %v74_v29  ;;  %v811_v36 = vpack.c.bf16 %v109_v33, %v108_v32  ;;  %v93_v38 = vld [vmem:[%s1397_s1 + $0x208] sm:$0xff]  ;;  %v110_v39 = vld [vmem:[%s1397_s1 + $0x290] sm:$0xff]  ;;  %v111_v40 = vld [vmem:[%s1397_s1 + $0x298] sm:$0xff] }
  0x19   :  { %770 = vmatpush3.bf16.msra.mxu0 %v769_v10  ;;  %v124_v41 = vld [vmem:[%s1397_s1 + $0x300] sm:$0xff]  ;;  %v125_v42 = vld [vmem:[%s1397_s1 + $0x308] sm:$0xff]  ;;  %v813_v44 = vpack.c.bf16 %v93_v38, %v92_v37  ;;  %v23_v45 = vld [vmem:[%s1396_s0 + $0x10] sm:$0xff]  ;;  %v815_v46 = vpack.c.bf16 %v111_v40, %v110_v39 }
  0x1a   :  { %772 = vmatprep.subr.bf16.mxu0 %v771_v14  ;;  %v21_v43 = vld [vmem:[%s1396_s0] sm:$0xff]  ;;  %v94_v47 = vld [vmem:[%s1397_s1 + $0x210] sm:$0xff]  ;;  %v95_v48 = vld [vmem:[%s1397_s1 + $0x218] sm:$0xff]  ;;  %v844_v49 = vpack.c.bf16 %v125_v42, %v124_v41 }
  0x1b   :  { %802 = vmatpush3.bf16.msra.mxu1 %v801_v13  ;;  %v112_v50 = vld [vmem:[%s1397_s1 + $0x2a0] sm:$0xff]  ;;  %v113_v52 = vld [vmem:[%s1397_s1 + $0x2a8] sm:$0xff]  ;;  %v126_v53 = vld [vmem:[%s1397_s1 + $0x310] sm:$0xff]  ;;  %v817_v55 = vpack.c.bf16 %v95_v48, %v94_v47 }
  0x1c   :  { %804 = vmatprep.subr.bf16.mxu1 %v803_v18  ;;  %v127_v54 = vld [vmem:[%s1397_s1 + $0x318] sm:$0xff]  ;;  %v96_v56 = vld [vmem:[%s1397_s1 + $0x220] sm:$0xff]  ;;  %v819_v57 = vpack.c.bf16 %v113_v52, %v112_v50  ;;  %v97_v58 = vld [vmem:[%s1397_s1 + $0x228] sm:$0xff] }
  0x1d   :  { %774 = vmatpush3.bf16.msra.mxu0 %v773_v24  ;;  %v847_v59 = vpack.c.bf16 %v127_v54, %v126_v53  ;;  %v114_v60 = vld [vmem:[%s1397_s1 + $0x2b0] sm:$0xff]  ;;  %v115_v61 = vld [vmem:[%s1397_s1 + $0x2b8] sm:$0xff]  ;;  %v128_v62 = vld [vmem:[%s1397_s1 + $0x320] sm:$0xff] }
  0x1e   :  { %776 = vmatprep.subr.bf16.mxu0 %v775_v26  ;;  %v129_v63 = vld [vmem:[%s1397_s1 + $0x328] sm:$0xff] }
  0x1f   :  { %806 = vmatpush3.bf16.msra.mxu1 %v805_v25  ;;  %v26_v0 = vld [vmem:[%s1396_s0 + $0x28] sm:$0xff] }
  0x20   :  { %808 = vmatprep.subr.bf16.mxu1 %v807_v30 }
  0x21   :  { %778 = vmatpush3.bf16.msra.mxu0 %v777_v34 }
  0x22   :  { %812 = vmatprep.subr.bf16.mxu0 %v811_v36 }
  0x23   :  { %810 = vmatpush3.bf16.msra.mxu1 %v809_v35 }
  0x24   :  { %843 = vmatprep.subr.bf16.mxu1 %v919_v51  ;;  %212 = vmatmul.mubr.f32.vlgmr.msra.gmra.mrb[0].mxu0 %v21_v43 }
  0x25   :  { %814 = vmatpush3.bf16.msra.mxu0 %v813_v44  ;;  %351 = vmatprep.mubr.f32.mxu0 %v26_v0 }
  0x26   :  { %282 = vmatmul.mubr.f32.vlgmr.msra.gmra.mrb[0].mxu1 %v23_v45  ;;  %816 = vmatprep.subr.bf16.mxu0 %v815_v46 }
  0x27   :  { %845 = vmatpush3.bf16.msra.mxu1 %v844_v49  ;;  %709 = vmatprep.mubr.msk.f32.mxu1 %vm920_vm0, %v921_v1 }
  0x28   :  { %846 = vmatprep.subr.bf16.mxu1 %v919_v51 }
  0x29   :  { %10 = vsyncpa [#allocation3], 0  ;;  %818 = vmatpush3.bf16.msra.mxu0 %v817_v55  ;;  %v821_v2 = vpack.c.bf16 %v97_v58, %v96_v56  ;;  %v823_v3 = vpack.c.bf16 %v115_v61, %v114_v60  ;;  %v98_v4 = vld [vmem:[%s1397_s1 + $0x230] sm:$0xff]  ;;  %v99_v5 = vld [vmem:[%s1397_s1 + $0x238] sm:$0xff]  ;;  %v850_v6 = vpack.c.bf16 %v129_v63, %v128_v62 }
  0x2a   :  { %820 = vmatprep.subr.bf16.mxu0 %v819_v57  ;;  %v116_v7 = vld [vmem:[%s1397_s1 + $0x2c0] sm:$0xff]  ;;  %v117_v8 = vld [vmem:[%s1397_s1 + $0x2c8] sm:$0xff]  ;;  %v130_v9 = vld [vmem:[%s1397_s1 + $0x330] sm:$0xff]  ;;  %v825_v11 = vpack.c.bf16 %v99_v5, %v98_v4 }
  0x2b   :  { %848 = vmatpush3.bf16.msra.mxu1 %v847_v59  ;;  %v131_v10 = vld [vmem:[%s1397_s1 + $0x338] sm:$0xff]  ;;  %v827_v12 = vpack.c.bf16 %v117_v8, %v116_v7  ;;  %v100_v13 = vld [vmem:[%s1397_s1 + $0x240] sm:$0xff]  ;;  %v101_v14 = vld [vmem:[%s1397_s1 + $0x248] sm:$0xff] }
  0x2c   :  { %849 = vmatprep.subr.bf16.mxu1 %v919_v51  ;;  %v853_v15 = vpack.c.bf16 %v131_v10, %v130_v9  ;;  %v118_v16 = vld [vmem:[%s1397_s1 + $0x2d0] sm:$0xff]  ;;  %v119_v17 = vld [vmem:[%s1397_s1 + $0x2d8] sm:$0xff]  ;;  %v132_v18 = vld [vmem:[%s1397_s1 + $0x340] sm:$0xff]  ;;  %v829_v20 = vpack.c.bf16 %v101_v14, %v100_v13 }
  0x2d   :  { %822 = vmatpush3.bf16.msra.mxu0 %v821_v2  ;;  %v133_v19 = vld [vmem:[%s1397_s1 + $0x348] sm:$0xff]  ;;  %v831_v21 = vpack.c.bf16 %v119_v17, %v118_v16  ;;  %v102_v22 = vld [vmem:[%s1397_s1 + $0x250] sm:$0xff]  ;;  %v103_v23 = vld [vmem:[%s1397_s1 + $0x258] sm:$0xff] }
  0x2e   :  { %824 = vmatprep.subr.bf16.mxu0 %v823_v3  ;;  %v856_v24 = vpack.c.bf16 %v133_v19, %v132_v18  ;;  %v120_v25 = vld [vmem:[%s1397_s1 + $0x2e0] sm:$0xff]  ;;  %v121_v26 = vld [vmem:[%s1397_s1 + $0x2e8] sm:$0xff]  ;;  %v134_v27 = vld [vmem:[%s1397_s1 + $0x350] sm:$0xff]  ;;  %v833_v29 = vpack.c.bf16 %v103_v23, %v102_v22 }
  0x2f   :  { %851 = vmatpush3.bf16.msra.mxu1 %v850_v6  ;;  %v135_v28 = vld [vmem:[%s1397_s1 + $0x358] sm:$0xff]  ;;  %v835_v30 = vpack.c.bf16 %v121_v26, %v120_v25  ;;  %v104_v31 = vld [vmem:[%s1397_s1 + $0x260] sm:$0xff]  ;;  %v105_v32 = vld [vmem:[%s1397_s1 + $0x268] sm:$0xff] }
  0x30   :  { %852 = vmatprep.subr.bf16.mxu1 %v919_v51  ;;  %v859_v33 = vpack.c.bf16 %v135_v28, %v134_v27  ;;  %v122_v34 = vld [vmem:[%s1397_s1 + $0x2f0] sm:$0xff]  ;;  %v123_v35 = vld [vmem:[%s1397_s1 + $0x2f8] sm:$0xff]  ;;  %v136_v36 = vld [vmem:[%s1397_s1 + $0x360] sm:$0xff]  ;;  %v837_v38 = vpack.c.bf16 %v105_v32, %v104_v31 }
  0x31   :  { %826 = vmatpush3.bf16.msra.mxu0 %v825_v11  ;;  %v137_v37 = vld [vmem:[%s1397_s1 + $0x368] sm:$0xff]  ;;  %v839_v39 = vpack.c.bf16 %v123_v35, %v122_v34  ;;  %v106_v40 = vld [vmem:[%s1397_s1 + $0x270] sm:$0xff]  ;;  %v107_v41 = vld [vmem:[%s1397_s1 + $0x278] sm:$0xff] }
  0x32   :  { %828 = vmatprep.subr.bf16.mxu0 %v827_v12  ;;  %v862_v42 = vpack.c.bf16 %v137_v37, %v136_v36  ;;  %v138_v43 = vld [vmem:[%s1397_s1 + $0x370] sm:$0xff]  ;;  %v139_v44 = vld [vmem:[%s1397_s1 + $0x378] sm:$0xff]  ;;  %v841_v45 = vpack.c.bf16 %v107_v41, %v106_v40  ;;  %v25_v47 = vld [vmem:[%s1396_s0 + $0x20] sm:$0xff] }
  0x33   :  { %854 = vmatpush3.bf16.msra.mxu1 %v853_v15  ;;  %v865_v46 = vpack.c.bf16 %v139_v44, %v138_v43  ;;  %v27_v48 = vld [vmem:[%s1396_s0 + $0x30] sm:$0xff]  ;;  %v428_v49 = vld [vmem:[%s1399_s3] sm:$0xff]  ;;  %v429_v50 = vld [vmem:[%s1399_s3 + $0x8] sm:$0xff] }
  0x34   :  { %855 = vmatprep.subr.bf16.mxu1 %v919_v51  ;;  %v430_v52 = vld [vmem:[%s1399_s3 + $0x10] sm:$0xff]  ;;  %v868_v53 = vpack.c.bf16 %v429_v50, %v428_v49  ;;  %v431_v54 = vld [vmem:[%s1399_s3 + $0x18] sm:$0xff]  ;;  %v432_v56 = vld [vmem:[%s1399_s3 + $0x20] sm:$0xff] }
  0x35   :  { %830 = vmatpush3.bf16.msra.mxu0 %v829_v20  ;;  %v871_v55 = vpack.c.bf16 %v431_v54, %v430_v52  ;;  %v433_v57 = vld [vmem:[%s1399_s3 + $0x28] sm:$0xff]  ;;  %v434_v59 = vld [vmem:[%s1399_s3 + $0x30] sm:$0xff]  ;;  %v435_v60 = vld [vmem:[%s1399_s3 + $0x38] sm:$0xff] }
  0x36   :  { %832 = vmatprep.subr.bf16.mxu0 %v831_v21  ;;  %v874_v58 = vpack.c.bf16 %v433_v57, %v432_v56  ;;  %v877_v61 = vpack.c.bf16 %v435_v60, %v434_v59  ;;  %v436_v62 = vld [vmem:[%s1399_s3 + $0x40] sm:$0xff]  ;;  %v437_v63 = vld [vmem:[%s1399_s3 + $0x48] sm:$0xff]  ;;  %v439_v2 = vld [vmem:[%s1399_s3 + $0x58] sm:$0xff] }
  0x37   :  { %857 = vmatpush3.bf16.msra.mxu1 %v856_v24  ;;  %v880_v0 = vpack.c.bf16 %v437_v63, %v436_v62  ;;  %v440_v4 = vld [vmem:[%s1399_s3 + $0x60] sm:$0xff]  ;;  %v441_v5 = vld [vmem:[%s1399_s3 + $0x68] sm:$0xff]  ;;  %v442_v7 = vld [vmem:[%s1399_s3 + $0x70] sm:$0xff] }
  0x38   :  { %858 = vmatprep.subr.bf16.mxu1 %v919_v51  ;;  %v886_v6 = vpack.c.bf16 %v441_v5, %v440_v4  ;;  %v443_v8 = vld [vmem:[%s1399_s3 + $0x78] sm:$0xff]  ;;  %v536_v11 = vld [vmem:[%s1398_s2] ss:$0 sm:$0xff]  ;;  %s922_s2 = smov [#allocation2]  }
  0x39   :  { %834 = vmatpush3.bf16.msra.mxu0 %v833_v29  ;;  %v889_v9 = vpack.c.bf16 %v443_v8, %v442_v7  ;;  %v537_v26 = vld [vmem:[%s1400_s4] ss:$0 sm:$0xff]  ;;  %s528_s12 = sshll.u32 %s922_s2, 4  ;;  %s529_s12 = int_to_ptr.vmem [resolvable:$true] %s528_s12 }
  0x3a   :  { %836 = vmatprep.subr.bf16.mxu0 %v835_v30  ;;  %s895_s13 = scalar_lea.vmem %s529_s12, 128  ;;  %p900_p1 = scmp.lt.s32.totalorder %s529_s12, %s529_s12 }
  0x3b   :  { %860 = vmatpush3.bf16.msra.mxu1 %v859_v33  ;;  %p896_p0 = scmp.ne.s32.totalorder %s529_s12, %s895_s13  ;;  %p901_p2 = scmp.lt.s32.totalorder %s895_s13, %s895_s13 }
  0x3c   :  { %861 = vmatprep.subr.bf16.mxu1 %v919_v51 }
  0x3d   :  { %838 = vmatpush3.bf16.msra.mxu0 %v837_v38  ;;  %p902_p3 = por %p901_p2, %p900_p1 }
  0x3e   :  { %840 = vmatprep.subr.bf16.mxu0 %v839_v39 }
  0x3f   :  { %863 = vmatpush3.bf16.msra.mxu1 %v862_v42  ;;  %p903_p4 = pnand %p902_p3, %p896_p0 }
  0x40   :  { %864 = vmatprep.subr.bf16.mxu1 %v919_v51 }
  0x41   :  { %842 = vmatpush3.bf16.msra.mxu0 %v841_v45 }
  0x42   :  { %867 = vmatprep.subr.bf16.mxu0 %v919_v51 }
  0x43   :  { %866 = vmatpush3.bf16.msra.mxu1 %v865_v46 }
  0x44   :  { %352 = vmatmul.mubr.f32.vlgmr.msra.gmra.mrb[2].mxu0 %v25_v47 }
  0x45   :  { %744 = vmatprep.mubr.msk.f32.mxu0 %vm920_vm0, %v921_v1  ;;  %869 = vmatpush3.bf16.msra.mxu0 %v868_v53  ;;  %v438_v1 = vld [vmem:[%s1399_s3 + $0x50] sm:$0xff] }
  0x46   :  { %710 = vmatmul.mubr.f32.vlgmr.msra.gmra.mrb[2].mxu1 %v27_v48  ;;  %870 = vmatprep.subr.bf16.mxu0 %v919_v51  ;;  %v883_v3 = vpack.c.bf16 %v439_v2, %v438_v1 }
  0x49   :  { %872 = vmatpush3.bf16.msra.mxu0 %v871_v55 }
  0x4a   :  { %873 = vmatprep.subr.bf16.mxu0 %v919_v51 }
  0x4d   :  { %875 = vmatpush3.bf16.msra.mxu0 %v874_v58 }
  0x4e   :  { %876 = vmatprep.subr.bf16.mxu0 %v919_v51 }
  0x51   :  { %878 = vmatpush3.bf16.msra.mxu0 %v877_v61 }
  0x52   :  { %879 = vmatprep.subr.bf16.mxu0 %v919_v51 }
  0x55   :  { %881 = vmatpush3.bf16.msra.mxu0 %v880_v0 }
  0x56   :  { %882 = vmatprep.subr.bf16.mxu0 %v919_v51 }
  0x59   :  { %884 = vmatpush3.bf16.msra.mxu0 %v883_v3 }
  0x5a   :  { %885 = vmatprep.subr.bf16.mxu0 %v919_v51 }
  0x5d   :  { %887 = vmatpush3.bf16.msra.mxu0 %v886_v6 }
  0x5e   :  { %888 = vmatprep.subr.bf16.mxu0 %v919_v51 }
  0x61   :  { %890 = vmatpush3.bf16.msra.mxu0 %v889_v9 }
  0xf7   :  { %v570_v10 = vpop.f32.mrb[0].mxu0 }
  0xf8   :  { %v571_v12 = vpop.f32.mrb[1].mxu0 }
  0xf9   :  { %v605_v13 = vpop.f32.mrb[0].mxu1  ;;  %v572_v14 = vadd.f32 %v571_v12, %v570_v10 }
  0xfa   :  { %v606_v15 = vpop.f32.mrb[1].mxu1 }
  0xfb   :  { %v607_v51 = vadd.f32 %v606_v15, %v605_v13  ;;  %v214_v16 = vadd.f32 %v572_v14, %v536_v11 }
  0xfd   :  { %v284_v17 = vadd.f32 %v607_v51, %v214_v16 }
 0x117   :  { %v640_v18 = vpop.f32.mrb[2].mxu0 }
 0x118   :  { %v641_v19 = vpop.f32.mrb[3].mxu0 }
 0x119   :  { %v423_v20 = vpop.f32.mrb[2].mxu1  ;;  %v642_v21 = vadd.f32 %v641_v19, %v640_v18 }
 0x11a   :  { %v711_v22 = vpop.f32.mrb[3].mxu1 }
 0x11b   :  { %v354_v23 = vadd.f32 %v642_v21, %v284_v17 }
 0x11d   :  { %v424_v24 = vadd.f32 %v423_v20, %v354_v23 }
 0x11f   :  { %v427_v25 = vmax.f32 %v424_v24, 0.0 }
 0x121   :  { %745 = vmatmul.mubr.f32.vlgmr.msra.gmra.mrb[4].mxu0 %v427_v25 }
 0x1f4   :  { %v517_v27 = vpop.f32.mrb[4].mxu0 }
 0x1f5   :  { %v518_v28 = vadd.f32 %v537_v26, %v517_v27  ;;  %v746_v29 = vpop.f32.mrb[5].mxu0 }
 0x1f7   :  { %521 = vst [vmem:[#allocation2] sm:$0xff] %v518_v28 }
 0x1f8   :  { %906 = shalt.err (!%p903_p4)
}
 0x1f9   :  { %s907_s16 = scalar_lea.hbm %s1401_s5, 128 }
 0x1fa   :  { %p908_p5 = scmp.ne.s32.totalorder %s1401_s5, %s907_s16  ;;  %p911_p6 = scmp.lt.u32.totalorder %s907_s16, %s1401_s5 }
 0x1fc   :  { %p913_p7 = pnand %p911_p6, %p908_p5 }
 0x1fe   :  { %916 = shalt.err (!%p913_p7)
}
 0x1ff   :  { %531 = dma.vmem_to_hbm [thread:$0]  %s529_s12, 128, %s1401_s5, [#allocation3]  }
 0x200   :  { %917 = dma.done.wait [#allocation3], 128  }
 0x201   :  { %918 = vsyncadd [#allocation3], 4294967168 }
 0x202   :  { %535 = vsyncpa [#allocation3], 1 }

</bundles_post_ra>
